<compile_context>
chip_gen: v7x
topology: tpu7x:2x2x1
jax: 0.10.0
libtpu: 0.0.40
codegen_flags: <defaults>
</compile_context>

<pallas_src>
import jax
import jax.numpy as jnp
from jax.experimental import pallas as pl
from jax.experimental.pallas import tpu as pltpu

INPUT_DIM = 4      # phase-space dimension (even, for canonical coordinates)
HIDDEN_DIM = 32
OUTPUT_DIM = 2     # (F1, F2)
OUT_ROWS = 8       # output rows padded 2 -> 8 (sublane tile); padded rows are exact zeros
LANE = 128         # TPU lane width
BM = 512           # batch tile (columns per grid step): grid=(2,) at B=1024
BATCH = 1024       # multiple of BM -> no batch padding, no tail handling


def permutation_tensor(n, assume_canonical_coords=True):
    """JAX equivalent of HNN.permutation_tensor (canonical-coords branch)."""
    if assume_canonical_coords:
        M = jnp.eye(n, dtype=jnp.float32)
        return jnp.concatenate([M[n // 2:], -M[: n // 2]], axis=0)
    # TODO(synk): Levi-Civita branch not needed for the default config.
    raise NotImplementedError


def hnn_mlp_kernel(xt_ref, w1_ref, b1_ref, w2_ref, b2_ref, w3_ref, b3_ref, yt_ref):
    """Fused transposed 3-layer tanh MLP.

    Shapes (per grid step, batch tile bm on the lane axis):
      xt:(D,bm)  W1:(H,D) b1:(H,1)  W2:(H,H) b2:(H,1)  W3:(8,H) b3:(8,1)
      h1 = tanh(W1 @ xt + b1)            -> (H, bm)
      h2 = tanh(W2 @ h1 + b2)            -> (H, bm)
      yt = W3 @ h2 + b3                  -> (8, bm)   rows 0/1 = F1/F2
    All matmuls are plain MXU dots; biases broadcast along lanes.
    """
    xt = xt_ref[...]
    # NOTE: layer 1 has K=4; it could be replaced by 4 VPU broadcast-FMAs to
    # skip an MXU push/pop round trip, but the dot lowers cleanly and the win
    # is sub-microsecond, so we keep the simpler form.
    h1 = jnp.tanh(
        jnp.dot(w1_ref[...], xt, preferred_element_type=jnp.float32) + b1_ref[...]
    )
    h2 = jnp.tanh(
        jnp.dot(w2_ref[...], h1, preferred_element_type=jnp.float32) + b2_ref[...]
    )
    yt = jnp.dot(w3_ref[...], h2, preferred_element_type=jnp.float32) + b3_ref[...]
    yt_ref[...] = yt.astype(yt_ref.dtype)


def prepare_params(params):
    """One-time weight prep (hoisted out of the per-call forward).

    Transposes weights to (out_features, in_features) and zero-pads the final
    layer's 2 output rows to 8 (exact: padded rows of W3/b3 are zero, so the
    extra output rows are identically zero and are never read).
    """
    w1, b1, w2, b2, w3, b3 = params            # (in, out) weights, (1, out) biases
    W1t = jnp.asarray(w1.T)                    # (H, D)
    b1t = jnp.asarray(b1.reshape(-1, 1))       # (H, 1)
    W2t = jnp.asarray(w2.T)                    # (H, H)
    b2t = jnp.asarray(b2.reshape(-1, 1))       # (H, 1)
    W3t = jnp.pad(w3.T, ((0, OUT_ROWS - OUTPUT_DIM), (0, 0)))              # (8, H)
    b3t = jnp.pad(b3.reshape(-1, 1), ((0, OUT_ROWS - OUTPUT_DIM), (0, 0)))  # (8, 1)
    return W1t, b1t, W2t, b2t, W3t, b3t


def hnn_forward(x, prepared_params, bm=BM):
    """HNN.forward: run the differentiable model, split output into (F1, F2)."""
    W1t, b1t, W2t, b2t, W3t, b3t = prepared_params
    B, D = x.shape
    H = W1t.shape[0]

    # Pick a batch tile that divides B exactly (no pad / unpad round trip).
    # bm must be a multiple of the lane width or cover the full batch.
    if (B % bm != 0) or (bm % LANE != 0):
        bm = B                      # single whole-batch tile (full-dim block, always legal)
    n_tiles = B // bm

    # Batch on the lane axis: one small wrapper transpose of x (a few KiB).
    xt = x.T                        # (D, B)

    yt = pl.pallas_call(
        hnn_mlp_kernel,
        out_shape=jax.ShapeDtypeStruct((OUT_ROWS, B), jnp.float32),
        grid_spec=pl.GridSpec(
            grid=(n_tiles,),
            in_specs=[
                pl.BlockSpec((D, bm), lambda i: (0, i)),        # x^T tile (streamed)
                pl.BlockSpec((H, D), lambda i: (0, 0)),         # W1 (resident)
                pl.BlockSpec((H, 1), lambda i: (0, 0)),         # b1
                pl.BlockSpec((H, H), lambda i: (0, 0)),         # W2
                pl.BlockSpec((H, 1), lambda i: (0, 0)),         # b2
                pl.BlockSpec((OUT_ROWS, H), lambda i: (0, 0)),  # W3 (rows padded to 8)
                pl.BlockSpec((OUT_ROWS, 1), lambda i: (0, 0)),  # b3
            ],
            out_specs=pl.BlockSpec((OUT_ROWS, bm), lambda i: (0, i)),  # lane-dense
        ),
        compiler_params=pltpu.CompilerParams(
            dimension_semantics=("parallel",),
        ),
    )(xt, W1t, b1t, W2t, b2t, W3t, b3t)

    # torch: y.split(1, 1) -> (F1, F2), each [batch, 1].
    # Rows 0/1 of the transposed output are contiguous views; reshape is free.
    F1 = yt[0].reshape(B, 1)
    F2 = yt[1].reshape(B, 1)
    return F1, F2


# TODO(synk): time_derivative() uses torch.autograd.grad w.r.t. the input; the
# analytic input-gradient of this 3-layer MLP (plus the dF @ [I ; M^T]
# contraction) could be fused into the same kernel while the weights are
# VMEM-resident, but the module's forward() only returns (F1, F2), so it is
# left out here.


def init_params(key):
    """Deterministic synthetic parameter init (torch.nn.Linear-equivalent shapes)."""
    k1, k2, k3 = jax.random.split(key, 3)
    s1 = 1.0 / jnp.sqrt(INPUT_DIM)
    s2 = 1.0 / jnp.sqrt(HIDDEN_DIM)
    w1 = jax.random.uniform(k1, (INPUT_DIM, HIDDEN_DIM), jnp.float32, -s1, s1)
    b1 = jnp.zeros((1, HIDDEN_DIM), jnp.float32)
    w2 = jax.random.uniform(k2, (HIDDEN_DIM, HIDDEN_DIM), jnp.float32, -s2, s2)
    b2 = jnp.zeros((1, HIDDEN_DIM), jnp.float32)
    w3 = jax.random.uniform(k3, (HIDDEN_DIM, OUTPUT_DIM), jnp.float32, -s2, s2)
    b3 = jnp.zeros((1, OUTPUT_DIM), jnp.float32)
    return (w1, b1, w2, b2, w3, b3)


def hnn_forward_ref(x, params):
    """Pure-JAX reference for correctness checking."""
    w1, b1, w2, b2, w3, b3 = params
    h1 = jnp.tanh(x @ w1 + b1)
    h2 = jnp.tanh(h1 @ w2 + b2)
    y = h2 @ w3 + b3
    return y[:, 0:1], y[:, 1:2]


if __name__ == "__main__":
    key = jax.random.PRNGKey(0)
    kx, kp = jax.random.split(key)
    x = jax.random.normal(kx, (BATCH, INPUT_DIM), jnp.float32)
    params = init_params(kp)
    prepared = prepare_params(params)      # one-time prep, outside the hot path
    M = permutation_tensor(INPUT_DIM)      # constructed as in __init__ (unused by forward)

    fwd = jax.jit(hnn_forward)
    F1, F2 = fwd(x, prepared)
    jax.block_until_ready((F1, F2))

    F1_ref, F2_ref = hnn_forward_ref(x, params)
    assert F1.shape == (BATCH, 1) and F2.shape == (BATCH, 1)
    assert jnp.allclose(F1, F1_ref, atol=1e-5, rtol=1e-5)
    assert jnp.allclose(F2, F2_ref, atol=1e-5, rtol=1e-5)

    print("KERNEL_OK")
</pallas_src>

<mosaic_0001>
module attributes {stable_mosaic.version = 11 : i64} {
  func.func @hnn_mlp_kernel(%arg0: i32, %arg1: memref<4x512xf32, #tpu.memory_space<vmem>>, %arg2: memref<32x4xf32, #tpu.memory_space<vmem>>, %arg3: memref<32x1xf32, #tpu.memory_space<vmem>>, %arg4: memref<32x32xf32, #tpu.memory_space<vmem>>, %arg5: memref<32x1xf32, #tpu.memory_space<vmem>>, %arg6: memref<8x32xf32, #tpu.memory_space<vmem>>, %arg7: memref<8x1xf32, #tpu.memory_space<vmem>>, %arg8: memref<8x512xf32, #tpu.memory_space<vmem>>) attributes {dimension_semantics = [#tpu.dimension_semantics<parallel>], iteration_bounds = array<i64: 2>, scalar_prefetch = 0 : i64, scratch_operands = 0 : i64, tpu.core_type = #tpu.core_type<tc>, window_params = [{transform_indices = @transform_0, window_bounds = array<i64: 4, 512>}, {pipeline_mode = #tpu.pipeline_mode<synchronous>, transform_indices = @transform_1, window_bounds = array<i64: 32, 4>}, {pipeline_mode = #tpu.pipeline_mode<synchronous>, transform_indices = @transform_2, window_bounds = array<i64: 32, 1>}, {pipeline_mode = #tpu.pipeline_mode<synchronous>, transform_indices = @transform_3, window_bounds = array<i64: 32, 32>}, {pipeline_mode = #tpu.pipeline_mode<synchronous>, transform_indices = @transform_4, window_bounds = array<i64: 32, 1>}, {pipeline_mode = #tpu.pipeline_mode<synchronous>, transform_indices = @transform_5, window_bounds = array<i64: 8, 32>}, {pipeline_mode = #tpu.pipeline_mode<synchronous>, transform_indices = @transform_6, window_bounds = array<i64: 8, 1>}, {transform_indices = @transform_7, window_bounds = array<i64: 8, 512>}]} {
    %c0 = arith.constant 0 : index
    %c0_0 = arith.constant 0 : index
    %0 = vector.load %arg1[%c0, %c0_0] : memref<4x512xf32, #tpu.memory_space<vmem>>, vector<4x512xf32>
    %c0_1 = arith.constant 0 : index
    %c0_2 = arith.constant 0 : index
    %1 = vector.load %arg2[%c0_1, %c0_2] : memref<32x4xf32, #tpu.memory_space<vmem>>, vector<32x4xf32>
    %cst = arith.constant dense<0.000000e+00> : vector<32x512xf32>
    %2 = tpu.matmul %1, %0, %cst {dimension_numbers = #tpu.dot_dimension_numbers<[1], [0], [0], [1], [0, 0, 1, 1], [], []>} : vector<32x4xf32>, vector<4x512xf32>, vector<32x512xf32> -> vector<32x512xf32>
    %c0_3 = arith.constant 0 : index
    %c0_4 = arith.constant 0 : index
    %3 = vector.load %arg3[%c0_3, %c0_4] : memref<32x1xf32, #tpu.memory_space<vmem>>, vector<32x1xf32>
    %4 = vector.broadcast %3 : vector<32x1xf32> to vector<32x512xf32>
    %5 = arith.addf %2, %4 : vector<32x512xf32>
    %6 = math.tanh %5 : vector<32x512xf32>
    %c0_5 = arith.constant 0 : index
    %c0_6 = arith.constant 0 : index
    %7 = vector.load %arg4[%c0_5, %c0_6] : memref<32x32xf32, #tpu.memory_space<vmem>>, vector<32x32xf32>
    %cst_7 = arith.constant dense<0.000000e+00> : vector<32x512xf32>
    %8 = tpu.matmul %7, %6, %cst_7 {dimension_numbers = #tpu.dot_dimension_numbers<[1], [0], [0], [1], [0, 0, 1, 1], [], []>} : vector<32x32xf32>, vector<32x512xf32>, vector<32x512xf32> -> vector<32x512xf32>
    %c0_8 = arith.constant 0 : index
    %c0_9 = arith.constant 0 : index
    %9 = vector.load %arg5[%c0_8, %c0_9] : memref<32x1xf32, #tpu.memory_space<vmem>>, vector<32x1xf32>
    %10 = vector.broadcast %9 : vector<32x1xf32> to vector<32x512xf32>
    %11 = arith.addf %8, %10 : vector<32x512xf32>
    %12 = math.tanh %11 : vector<32x512xf32>
    %c0_10 = arith.constant 0 : index
    %c0_11 = arith.constant 0 : index
    %13 = vector.load %arg6[%c0_10, %c0_11] : memref<8x32xf32, #tpu.memory_space<vmem>>, vector<8x32xf32>
    %cst_12 = arith.constant dense<0.000000e+00> : vector<8x512xf32>
    %14 = tpu.matmul %13, %12, %cst_12 {dimension_numbers = #tpu.dot_dimension_numbers<[1], [0], [0], [1], [0, 0, 1, 1], [], []>} : vector<8x32xf32>, vector<32x512xf32>, vector<8x512xf32> -> vector<8x512xf32>
    %c0_13 = arith.constant 0 : index
    %c0_14 = arith.constant 0 : index
    %15 = vector.load %arg7[%c0_13, %c0_14] : memref<8x1xf32, #tpu.memory_space<vmem>>, vector<8x1xf32>
    %16 = vector.broadcast %15 : vector<8x1xf32> to vector<8x512xf32>
    %17 = arith.addf %14, %16 : vector<8x512xf32>
    %c0_15 = arith.constant 0 : index
    %c0_16 = arith.constant 0 : index
    %18 = vector.load %arg8[%c0_15, %c0_16] : memref<8x512xf32, #tpu.memory_space<vmem>>, vector<8x512xf32>
    tpu.vector_store %arg8[%c0_15, %c0_16], %17 {strides = array<i32>} : memref<8x512xf32, #tpu.memory_space<vmem>>, vector<8x512xf32>,
    return
  }
  func.func @transform_0(%arg0: i32) -> (i32, i32) {
    %c0_i32 = arith.constant 0 : i32
    %c0_i32_0 = arith.constant 0 : i32
    return %c0_i32, %arg0 : i32, i32
  }
  func.func @transform_1(%arg0: i32) -> (i32, i32) {
    %c0_i32 = arith.constant 0 : i32
    %c0_i32_0 = arith.constant 0 : i32
    %c0_i32_1 = arith.constant 0 : i32
    return %c0_i32, %c0_i32_0 : i32, i32
  }
  func.func @transform_2(%arg0: i32) -> (i32, i32) {
    %c0_i32 = arith.constant 0 : i32
    %c0_i32_0 = arith.constant 0 : i32
    %c0_i32_1 = arith.constant 0 : i32
    return %c0_i32, %c0_i32_0 : i32, i32
  }
  func.func @transform_3(%arg0: i32) -> (i32, i32) {
    %c0_i32 = arith.constant 0 : i32
    %c0_i32_0 = arith.constant 0 : i32
    %c0_i32_1 = arith.constant 0 : i32
    return %c0_i32, %c0_i32_0 : i32, i32
  }
  func.func @transform_4(%arg0: i32) -> (i32, i32) {
    %c0_i32 = arith.constant 0 : i32
    %c0_i32_0 = arith.constant 0 : i32
    %c0_i32_1 = arith.constant 0 : i32
    return %c0_i32, %c0_i32_0 : i32, i32
  }
  func.func @transform_5(%arg0: i32) -> (i32, i32) {
    %c0_i32 = arith.constant 0 : i32
    %c0_i32_0 = arith.constant 0 : i32
    %c0_i32_1 = arith.constant 0 : i32
    return %c0_i32, %c0_i32_0 : i32, i32
  }
  func.func @transform_6(%arg0: i32) -> (i32, i32) {
    %c0_i32 = arith.constant 0 : i32
    %c0_i32_0 = arith.constant 0 : i32
    %c0_i32_1 = arith.constant 0 : i32
    return %c0_i32, %c0_i32_0 : i32, i32
  }
  func.func @transform_7(%arg0: i32) -> (i32, i32) {
    %c0_i32 = arith.constant 0 : i32
    %c0_i32_0 = arith.constant 0 : i32
    return %c0_i32, %arg0 : i32, i32
  }
}

</mosaic_0001>

<bundles_post_ra>
// kernel: hnn_forward.1
= control target key start
LH: loop header
LB: loop body
LE: loop exit
PB: predicated region body
PF: predicated region fallthrough
CT: control target
= control target key end

     0   :  { %s1172_s24 = smov 0   ;;  %s1283_s0 = inlined_call_operand.vmem [shape: f32[4,1024], index: 0, kind: input, shape index: {}]   ;;  %s1284_s1 = inlined_call_operand.vmem [shape: f32[32,4], index: 1, kind: input, shape index: {}]   ;;  %s1285_s2 = inlined_call_operand.vmem [shape: f32[32,1], index: 2, kind: input, shape index: {}]   ;;  %s1286_s3 = inlined_call_operand.vmem [shape: f32[32,32], index: 3, kind: input, shape index: {}]   ;;  %s1287_s4 = inlined_call_operand.vmem [shape: f32[32,1], index: 4, kind: input, shape index: {}]   ;;  %s1288_s5 = inlined_call_operand.vmem [shape: f32[8,32], index: 5, kind: input, shape index: {}]   ;;  %s1289_s6 = inlined_call_operand.vmem [shape: f32[8,1], index: 6, kind: input, shape index: {}]   ;;  %s1290_s7 = inlined_call_operand.vmem [shape: f32[8,1024], index: 7, kind: output, shape index: {}]  }
   0x1 LB: > { %s979_s25 = sadd.s32 4294967295, %s1128_s24   ;;  %p983_p0 = scmp.ge.s32.totalorder %s1128_s24, 1  ;;  %s1128_s24 = sphi %s1172_s24, %s17_s24  }
   0x2   : > { %p238_p1 = scmp.lt.s32.totalorder %s1128_s24, 3 }
   0x4   : > { %p239_p2 = pnand %p983_p0, %p238_p1 }
   0x5   : > { %s984_s26 = sshll.u32 (!%p239_p2), %s979_s25, 2  ;;  %v1130_v0 = vmov (!%p239_p2), 0.0   ;;  %v288_v1 = vld [vmem:[%s1285_s2] sm:$0xff] (!%p239_p2)  ;;  %v1131_v2 = vmov (!%p239_p2), 0   ;;  %v290_v3 = vld [vmem:[%s1285_s2 + $0x10] sm:$0xff] (!%p239_p2)  ;;  %v289_v4 = vld [vmem:[%s1285_s2 + $0x8] sm:$0xff] (!%p239_p2) }
   0x6   : > { %242 = sbr.rel (%p239_p2) target bundleno = 728 (0x2d8), region = 48  ;;  %p271_p3 = scmp.lt.s32.totalorder (!%p239_p2), %s984_s26, 7  ;;  %402 = vmatprep.mubr.f32.mxu0 (!%p239_p2), %v1130_v0  ;;  %491 = vmatprep.mubr.f32.mxu1 (!%p239_p2), %v1130_v0  ;;  %v291_v5 = vld [vmem:[%s1285_s2 + $0x18] sm:$0xff] (!%p239_p2)  ;;  %vm329_vm0 = vcmask (!%p239_p2), 1043456   ;;  %v284_v10 = vld [vmem:[%s1284_s1] sm:$0xff] (!%p239_p2)  ;;  %vm316_vm1 = vcmask (!%p239_p2), 31744  }
   0x7   : > { %1054 = vset.pattern.permute.xlu0 (!%p239_p2), %v1131_v2  ;;  %1055 = vset.pattern.permute.xlu1 (!%p239_p2), %v1131_v2  ;;  %v536_v11 = vld [vmem:[%s1287_s4] sm:$0xff] (!%p239_p2)  ;;  %v537_v12 = vld [vmem:[%s1287_s4 + $0x8] sm:$0xff] (!%p239_p2)  ;;  %v538_v14 = vld [vmem:[%s1287_s4 + $0x10] sm:$0xff] (!%p239_p2)  ;;  %vm560_vm2 = vcmask (!%p239_p2), 261120  }
   0x8   : > { %294 = vperm.xlu0 (!%p239_p2), %1054, %v288_v1   ;;  %304 = vperm.xlu1 (!%p239_p2), %1055, %v290_v3   ;;  %v285_v13 = vld [vmem:[%s1284_s1 + $0x8] sm:$0xff] (!%p239_p2)  ;;  %v539_v15 = vld [vmem:[%s1287_s4 + $0x18] sm:$0xff] (!%p239_p2)  ;;  %v286_v16 = vld [vmem:[%s1284_s1 + $0x10] sm:$0xff] (!%p239_p2) }
   0x9   : > { %v768_v17 = vld [vmem:[%s1289_s6] sm:$0xff] (!%p239_p2)  ;;  %v287_v18 = vld [vmem:[%s1284_s1 + $0x18] sm:$0xff] (!%p239_p2) }
   0xc   : > { %299 = vperm.xlu0 (!%p239_p2), %1054, %v289_v4   ;;  %309 = vperm.xlu1 (!%p239_p2), %1055, %v291_v5  }
   0xd   : > { %s1292_s26 = smov (!%p271_p3, %s984_s26), 7 }
   0xe   : > { %s985_s12 = sshll.u32 %s1292_s26, 2  ;;  %s987_s23 = sshll.u32 %s1292_s26, 3 }
   0xf   : > { %s274_s15 = scalar_lea.vmem %s1283_s0, %s985_s12  ;;  %s280_s28 = scalar_lea.vmem %s1290_s7, %s987_s23 }
  0x10   : > { %v282_v6 = vld [vmem:[%s274_s15] sm:$0xff]  ;;  %v283_v7 = vld [vmem:[%s274_s15 + $0x8] sm:$0xff]  ;;  %542 = vperm.xlu0 %1054, %v536_v11   ;;  %547 = vperm.xlu1 %1055, %v537_v12  }
  0x11   : > { %v314_v8 = vcombine.high %v282_v6, %v282_v6  ;;  %v315_v9 = vcombine.high %v283_v7, %v283_v7 }
  0x13   : > { %988 = vmatprep.subr.msk.mxu0 %vm329_vm0, %v314_v8  ;;  %994 = vmatprep.subr.msk.mxu1 %vm329_vm0, %v315_v9 }
  0x14   : > { %989 = vmatpush1.msk.msra.mxu0 %vm329_vm0, %v282_v6  ;;  %995 = vmatpush1.msk.msra.mxu1 %vm329_vm0, %v283_v7 }
  0x15   : > { %990 = vmatmul.mubr.msk.f32.vlgmr.msra.gmra.mrb[0].mxu0 %vm316_vm1, %v284_v10  ;;  %996 = vmatmul.mubr.msk.f32.vlgmr.msra.gmra.mrb[0].mxu1 %vm316_vm1, %v284_v10 }
  0x16   : > { %408 = vmatprep.mubr.f32.mxu0 %v1130_v0  ;;  %497 = vmatprep.mubr.f32.mxu1 %v1130_v0 }
  0x17   : > { %552 = vperm.xlu0 %1054, %v538_v14   ;;  %557 = vperm.xlu1 %1055, %v539_v15  }
  0x19   : > { %991 = vmatmul.mubr.msk.f32.gmra.mrb[2].mxu0 %vm316_vm1, %v285_v13  ;;  %997 = vmatmul.mubr.msk.f32.gmra.mrb[2].mxu1 %vm316_vm1, %v285_v13 }
  0x1a   : > { %414 = vmatprep.mubr.f32.mxu0 %v1130_v0  ;;  %503 = vmatprep.mubr.f32.mxu1 %v1130_v0 }
  0x1b   : > { %771 = vperm.xlu0 %1054, %v768_v17   ;;  %v533_v17 = vld [vmem:[%s1286_s3 + $0x8] sm:$0xff] }
  0x1d   : > { %992 = vmatmul.mubr.msk.f32.gmra.mrb[4].mxu0 %vm316_vm1, %v286_v16  ;;  %998 = vmatmul.mubr.msk.f32.gmra.mrb[4].mxu1 %vm316_vm1, %v286_v16  ;;  %v532_v16 = vld [vmem:[%s1286_s3] sm:$0xff] }
  0x1e   : > { %420 = vmatprep.mubr.f32.mxu0 %v1130_v0  ;;  %509 = vmatprep.mubr.f32.mxu1 %v1130_v0 }
  0x21   : > { %993 = vmatmul.mubr.msk.f32.gmra.mrb[6].mxu0 %vm316_vm1, %v287_v18  ;;  %999 = vmatmul.mubr.msk.f32.gmra.mrb[6].mxu1 %vm316_vm1, %v287_v18  ;;  %v534_v18 = vld [vmem:[%s1286_s3 + $0x10] sm:$0xff] }
  0x22   : > { %637 = vmatprep.mubr.f32.mxu0 %v1130_v0  ;;  %726 = vmatprep.mubr.f32.mxu1 %v1130_v0 }
  0x87   : > { %v295_v19 = vpop.permute.xlu0 %294  ;;  %v305_v29 = vpop.permute.xlu1 %304 }
  0x8b   : > { %v300_v28 = vpop.permute.xlu0 %299  ;;  %v310_v46 = vpop.permute.xlu1 %309 }
  0xe8   : > { %v404_v20 = vpop.f32.mrb[0].mxu0  ;;  %v493_v21 = vpop.f32.mrb[0].mxu1 }
  0xe9   : > { %v405_v22 = vadd.f32 %v404_v20, %v295_v19  ;;  %v494_v23 = vadd.f32 %v493_v21, %v295_v19  ;;  %v406_v24 = vpop.f32.mrb[1].mxu0  ;;  %v495_v25 = vpop.f32.mrb[1].mxu1 }
  0xea   : > { %v407_v26 = vadd.f32 %v406_v24, %v295_v19  ;;  %v496_v27 = vadd.f32 %v495_v25, %v295_v19  ;;  %v535_v19 = vld [vmem:[%s1286_s3 + $0x18] sm:$0xff]  ;;  %v543_v20 = vpop.permute.xlu0 %542 }
  0xeb   : > { %1058 = vtanh.f32 %v405_v22 }
  0xec   : > { %1060 = vtanh.f32 %v494_v23  ;;  %v410_v30 = vpop.f32.mrb[2].mxu0  ;;  %v499_v31 = vpop.f32.mrb[2].mxu1 }
  0xed   : > { %1062 = vtanh.f32 %v407_v26  ;;  %v411_v32 = vadd.f32 %v410_v30, %v300_v28  ;;  %v500_v33 = vadd.f32 %v499_v31, %v300_v28  ;;  %v412_v34 = vpop.f32.mrb[3].mxu0  ;;  %v501_v35 = vpop.f32.mrb[3].mxu1 }
  0xee   : > { %1064 = vtanh.f32 %v496_v27  ;;  %v413_v36 = vadd.f32 %v412_v34, %v300_v28  ;;  %v502_v37 = vadd.f32 %v501_v35, %v300_v28 }
  0xef   : > { %1066 = vtanh.f32 %v411_v32 }
  0xf0   : > { %1068 = vtanh.f32 %v500_v33  ;;  %v416_v38 = vpop.f32.mrb[4].mxu0  ;;  %v505_v39 = vpop.f32.mrb[4].mxu1 }
  0xf1   : > { %1070 = vtanh.f32 %v413_v36  ;;  %v417_v40 = vadd.f32 %v416_v38, %v305_v29  ;;  %v506_v41 = vadd.f32 %v505_v39, %v305_v29  ;;  %v418_v42 = vpop.f32.mrb[5].mxu0  ;;  %v507_v43 = vpop.f32.mrb[5].mxu1 }
  0xf2   : > { %1072 = vtanh.f32 %v502_v37  ;;  %v419_v44 = vadd.f32 %v418_v42, %v305_v29  ;;  %v508_v45 = vadd.f32 %v507_v43, %v305_v29  ;;  %v548_v29 = vpop.permute.xlu1 %547  ;;  %v553_v37 = vpop.permute.xlu0 %552 }
  0xf3   : > { %1074 = vtanh.f32 %v417_v40 }
  0xf4   : > { %1076 = vtanh.f32 %v506_v41  ;;  %v422_v47 = vpop.f32.mrb[6].mxu0  ;;  %v511_v48 = vpop.f32.mrb[6].mxu1 }
  0xf5   : > { %v1059_v49 = vpop.eup %1058  ;;  %1078 = vtanh.f32 %v419_v44  ;;  %v423_v50 = vadd.f32 %v422_v47, %v310_v46  ;;  %v512_v51 = vadd.f32 %v511_v48, %v310_v46  ;;  %v424_v52 = vpop.f32.mrb[7].mxu0 }
  0xf6   : > { %v513_v53 = vpop.f32.mrb[7].mxu1  ;;  %v1061_v54 = vpop.eup %1060  ;;  %1080 = vtanh.f32 %v508_v45  ;;  %v425_v55 = vadd.f32 %v424_v52, %v310_v46 }
  0xf7   : > { %v514_v56 = vadd.f32 %v513_v53, %v310_v46  ;;  %v1063_v57 = vpop.eup %1062  ;;  %1082 = vtanh.f32 %v423_v50  ;;  %v558_v46 = vpop.permute.xlu1 %557 }
  0xf8   : > { %v1065_v58 = vpop.eup %1064  ;;  %1084 = vtanh.f32 %v512_v51 }
  0xf9   : > { %v1067_v59 = vpop.eup %1066  ;;  %1086 = vtanh.f32 %v425_v55 }
  0xfa   : > { %v1069_v60 = vpop.eup %1068  ;;  %1088 = vtanh.f32 %v514_v56  ;;  %v1014_v61 = vpack.c.bf16 %v1067_v59, %v1059_v49 }
  0xfb   : > { %v1071_v62 = vpop.eup %1070  ;;  %v1022_v63 = vpack.c.bf16 %v1069_v60, %v1061_v54 }
  0xfc   : > { %v1073_v1 = vpop.eup %1072  ;;  %v1012_v2 = vpack.c.bf16 %v1071_v62, %v1063_v57 }
  0xfd   : > { %v1075_v3 = vpop.eup %1074  ;;  %v1020_v4 = vpack.c.bf16 %v1073_v1, %v1065_v58 }
  0xfe   : > { %v1077_v5 = vpop.eup %1076  ;;  %1013 = vmatprep.subr.bf16.mxu0 %v1012_v2 }
  0xff   : > { %v1079_v6 = vpop.eup %1078  ;;  %1021 = vmatprep.subr.bf16.mxu1 %v1020_v4  ;;  %1015 = vmatpush1.bf16.msra.mxu0 %v1014_v61 }
 0x100   : > { %v1081_v7 = vpop.eup %1080  ;;  %1023 = vmatpush1.bf16.msra.mxu1 %v1022_v63 }
 0x101   : > { %v1083_v8 = vpop.eup %1082 }
 0x102   : > { %v1085_v9 = vpop.eup %1084  ;;  %v1018_v10 = vpack.c.bf16 %v1083_v8, %v1075_v3 }
 0x103   : > { %v1087_v11 = vpop.eup %1086  ;;  %v1026_v12 = vpack.c.bf16 %v1085_v9, %v1077_v5 }
 0x104   : > { %v1089_v13 = vpop.eup %1088  ;;  %v1016_v14 = vpack.c.bf16 %v1087_v11, %v1079_v6 }
 0x105   : > { %v1024_v15 = vpack.c.bf16 %v1089_v13, %v1081_v7 }
 0x106   : > { %1017 = vmatprep.subr.bf16.mxu0 %v1016_v14 }
 0x107   : > { %1025 = vmatprep.subr.bf16.mxu1 %v1024_v15  ;;  %1019 = vmatpush1.bf16.msra.mxu0 %v1018_v10 }
 0x108   : > { %1027 = vmatpush1.bf16.msra.mxu1 %v1026_v12 }
 0x10a   : > { %1000 = vmatmul.mubr.msk.f32.vlgmr.msra.gmra.mrb[8].mxu0 %vm560_vm2, %v532_v16 }
 0x10b   : > { %1004 = vmatmul.mubr.msk.f32.vlgmr.msra.gmra.mrb[8].mxu1 %vm560_vm2, %v532_v16  ;;  %643 = vmatprep.mubr.f32.mxu0 %v1130_v0  ;;  %v767_v16 = vld [vmem:[%s1288_s5] sm:$0xff] }
 0x10c   : > { %732 = vmatprep.mubr.f32.mxu1 %v1130_v0 }
 0x10e   : > { %1001 = vmatmul.mubr.msk.f32.gmra.mrb[10].mxu0 %vm560_vm2, %v533_v17 }
 0x10f   : > { %1005 = vmatmul.mubr.msk.f32.gmra.mrb[10].mxu1 %vm560_vm2, %v533_v17  ;;  %649 = vmatprep.mubr.f32.mxu0 %v1130_v0  ;;  %v772_v17 = vpop.permute.xlu0 %771 }
 0x110   : > { %738 = vmatprep.mubr.f32.mxu1 %v1130_v0 }
 0x112   : > { %1002 = vmatmul.mubr.msk.f32.gmra.mrb[12].mxu0 %vm560_vm2, %v534_v18 }
 0x113   : > { %1006 = vmatmul.mubr.msk.f32.gmra.mrb[12].mxu1 %vm560_vm2, %v534_v18  ;;  %655 = vmatprep.mubr.f32.mxu0 %v1130_v0 }
 0x114   : > { %744 = vmatprep.mubr.f32.mxu1 %v1130_v0 }
 0x116   : > { %1003 = vmatmul.mubr.msk.f32.gmra.mrb[14].mxu0 %vm560_vm2, %v535_v19 }
 0x117   : > { %1007 = vmatmul.mubr.msk.f32.gmra.mrb[14].mxu1 %vm560_vm2, %v535_v19  ;;  %841 = vmatprep.mubr.f32.mxu0 %v1130_v0 }
 0x118   : > { %912 = vmatprep.mubr.f32.mxu1 %v1130_v0 }
 0x1dd   : > { %v639_v21 = vpop.f32.mrb[8].mxu0 }
 0x1de   : > { %v640_v22 = vadd.f32 %v639_v21, %v543_v20  ;;  %v728_v23 = vpop.f32.mrb[8].mxu1  ;;  %v641_v24 = vpop.f32.mrb[9].mxu0 }
 0x1df   : > { %v729_v25 = vadd.f32 %v728_v23, %v543_v20  ;;  %v642_v26 = vadd.f32 %v641_v24, %v543_v20  ;;  %v730_v27 = vpop.f32.mrb[9].mxu1 }
 0x1e0   : > { %1090 = vtanh.f32 %v640_v22  ;;  %v731_v28 = vadd.f32 %v730_v27, %v543_v20 }
 0x1e1   : > { %1092 = vtanh.f32 %v729_v25  ;;  %v645_v30 = vpop.f32.mrb[10].mxu0 }
 0x1e2   : > { %1094 = vtanh.f32 %v642_v26  ;;  %v646_v31 = vadd.f32 %v645_v30, %v548_v29  ;;  %v734_v32 = vpop.f32.mrb[10].mxu1  ;;  %v647_v33 = vpop.f32.mrb[11].mxu0 }
 0x1e3   : > { %1096 = vtanh.f32 %v731_v28  ;;  %v735_v34 = vadd.f32 %v734_v32, %v548_v29  ;;  %v648_v0 = vadd.f32 %v647_v33, %v548_v29  ;;  %v736_v35 = vpop.f32.mrb[11].mxu1 }
 0x1e4   : > { %1098 = vtanh.f32 %v646_v31  ;;  %v737_v36 = vadd.f32 %v736_v35, %v548_v29 }
 0x1e5   : > { %1100 = vtanh.f32 %v735_v34  ;;  %v651_v38 = vpop.f32.mrb[12].mxu0 }
 0x1e6   : > { %1102 = vtanh.f32 %v648_v0  ;;  %v652_v39 = vadd.f32 %v651_v38, %v553_v37  ;;  %v740_v40 = vpop.f32.mrb[12].mxu1  ;;  %v653_v41 = vpop.f32.mrb[13].mxu0 }
 0x1e7   : > { %1104 = vtanh.f32 %v737_v36  ;;  %v741_v42 = vadd.f32 %v740_v40, %v553_v37  ;;  %v654_v43 = vadd.f32 %v653_v41, %v553_v37  ;;  %v742_v44 = vpop.f32.mrb[13].mxu1 }
 0x1e8   : > { %1106 = vtanh.f32 %v652_v39  ;;  %v743_v45 = vadd.f32 %v742_v44, %v553_v37 }
 0x1e9   : > { %1108 = vtanh.f32 %v741_v42  ;;  %v657_v47 = vpop.f32.mrb[14].mxu0 }
 0x1ea   : > { %v1091_v48 = vpop.eup %1090  ;;  %1110 = vtanh.f32 %v654_v43  ;;  %v658_v49 = vadd.f32 %v657_v47, %v558_v46  ;;  %v746_v50 = vpop.f32.mrb[14].mxu1 }
 0x1eb   : > { %v659_v51 = vpop.f32.mrb[15].mxu0  ;;  %v1093_v52 = vpop.eup %1092  ;;  %1112 = vtanh.f32 %v743_v45  ;;  %v747_v53 = vadd.f32 %v746_v50, %v558_v46 }
 0x1ec   : > { %v660_v54 = vadd.f32 %v659_v51, %v558_v46  ;;  %v748_v55 = vpop.f32.mrb[15].mxu1  ;;  %v1095_v56 = vpop.eup %1094  ;;  %1114 = vtanh.f32 %v658_v49 }
 0x1ed   : > { %v749_v57 = vadd.f32 %v748_v55, %v558_v46  ;;  %v1097_v58 = vpop.eup %1096  ;;  %1116 = vtanh.f32 %v747_v53 }
 0x1ee   : > { %v1099_v59 = vpop.eup %1098  ;;  %1118 = vtanh.f32 %v660_v54 }
 0x1ef   : > { %v1101_v60 = vpop.eup %1100  ;;  %1120 = vtanh.f32 %v749_v57  ;;  %v1030_v61 = vpack.c.bf16 %v1099_v59, %v1091_v48 }
 0x1f0   : > { %v1103_v62 = vpop.eup %1102  ;;  %v1038_v63 = vpack.c.bf16 %v1101_v60, %v1093_v52 }
 0x1f1   : > { %v1105_v1 = vpop.eup %1104  ;;  %v1028_v2 = vpack.c.bf16 %v1103_v62, %v1095_v56 }
 0x1f2   : > { %v1107_v3 = vpop.eup %1106  ;;  %v1036_v4 = vpack.c.bf16 %v1105_v1, %v1097_v58 }
 0x1f3   : > { %v1109_v5 = vpop.eup %1108  ;;  %1029 = vmatprep.subr.bf16.mxu0 %v1028_v2 }
 0x1f4   : > { %v1111_v6 = vpop.eup %1110  ;;  %1037 = vmatprep.subr.bf16.mxu1 %v1036_v4  ;;  %1031 = vmatpush1.bf16.msra.mxu0 %v1030_v61 }
 0x1f5   : > { %v1113_v7 = vpop.eup %1112  ;;  %1039 = vmatpush1.bf16.msra.mxu1 %v1038_v63 }
 0x1f6   : > { %v1115_v8 = vpop.eup %1114 }
 0x1f7   : > { %v1117_v9 = vpop.eup %1116  ;;  %v1034_v10 = vpack.c.bf16 %v1115_v8, %v1107_v3 }
 0x1f8   : > { %v1119_v11 = vpop.eup %1118  ;;  %v1042_v12 = vpack.c.bf16 %v1117_v9, %v1109_v5 }
 0x1f9   : > { %v1121_v13 = vpop.eup %1120  ;;  %v1032_v14 = vpack.c.bf16 %v1119_v11, %v1111_v6 }
 0x1fa   : > { %v1040_v15 = vpack.c.bf16 %v1121_v13, %v1113_v7 }
 0x1fb   : > { %1033 = vmatprep.subr.bf16.mxu0 %v1032_v14 }
 0x1fc   : > { %1041 = vmatprep.subr.bf16.mxu1 %v1040_v15  ;;  %1035 = vmatpush1.bf16.msra.mxu0 %v1034_v10 }
 0x1fd   : > { %1043 = vmatpush1.bf16.msra.mxu1 %v1042_v12 }
 0x1ff   : > { %1008 = vmatmul.mubr.msk.f32.vlgmr.msra.gmra.mrb[16].mxu0 %vm560_vm2, %v767_v16 }
 0x200   : > { %1009 = vmatmul.mubr.msk.f32.vlgmr.msra.gmra.mrb[16].mxu1 %vm560_vm2, %v767_v16 }
 0x2d2   : > { %v843_v18 = vpop.f32.mrb[16].mxu0 }
 0x2d3   : > { %v844_v19 = vadd.f32 %v843_v18, %v772_v17  ;;  %v914_v20 = vpop.f32.mrb[16].mxu1  ;;  %v845_v21 = vpop.f32.mrb[17].mxu0 }
 0x2d4   : > { %v846_v22 = vadd.f32 %v845_v21, %v772_v17  ;;  %v916_v23 = vpop.f32.mrb[17].mxu1  ;;  %v915_v24 = vadd.f32 %v914_v20, %v772_v17 }
 0x2d5   : > { %919 = vst [vmem:[%s280_s28] sm:$0xff] %v844_v19  ;;  %v917_v25 = vadd.f32 %v916_v23, %v772_v17 }
 0x2d6   : > { %920 = vst [vmem:[%s280_s28 + $0x8] sm:$0xff] %v846_v22  ;;  %921 = vst [vmem:[%s280_s28 + $0x10] sm:$0xff] %v915_v24 }
 0x2d7   : > { %922 = vst [vmem:[%s280_s28 + $0x18] sm:$0xff] %v917_v25 }
 0x2d8 PF: > { %s17_s24 = sadd.s32 1, %s1128_s24  }
 0x2d9   : > { %p14_p4 = scmp.ge.s32.totalorder %s17_s24, 4  }
 0x2db   :  { %16 = sbr.rel (!%p14_p4) target bundleno = 1 (0x1), region = 78 }

</bundles_post_ra>
